<compile_context>
chip_gen: v7x
topology: tpu7x:2x2x1
jax: 0.10.0
libtpu: 0.0.40
codegen_flags: <defaults>
</compile_context>

<pallas_src>
import functools

import jax
import jax.numpy as jnp
from jax import lax
from jax.experimental import pallas as pl
from jax.experimental.pallas import tpu as pltpu

GAMMA_NEG = 4.0
GAMMA_POS = 1.0
CLIP = 0.05
EPS = 1e-8

_MAX_TILE_COLS = 2048
_MAX_TILE_ROWS = 512          # 512-row tiles already reach ~85% of HBM roofline
_STRIP_ROWS = 64              # rows processed per inner-loop step


def _round_up(a, m):
    return ((a + m - 1) // m) * m


def _vmem_limit_bytes():
    """Generation-aware scoped-VMEM limit: ~half of physical, capped at 64 MiB."""
    cap = None
    try:
        info = pltpu.get_tpu_info()
        for name in ("vmem_capacity_bytes", "vmem_size_bytes", "vmem_bytes"):
            cap = getattr(info, name, None)
            if cap:
                break
    except Exception:
        cap = None
    if not cap:
        return 32 * 1024 * 1024          # safe everywhere (v7x physical is 64 MiB)
    return int(min(int(cap) // 2, 64 * 1024 * 1024))


def _const_pow(base, gamma):
    """base ** gamma for a compile-time-constant gamma (no tensor exponent)."""
    g = float(gamma)
    if g == 0.0:
        return jnp.ones_like(base)
    if g.is_integer() and 0 < g <= 64:
        return lax.integer_pow(base, int(g))     # pure VPU multiplies
    return jnp.power(base, jnp.float32(g))       # EUP, but constant exponent


def _asl_kernel(x_ref, y_ref, o_ref, *, gamma_neg, gamma_pos, clip, eps,
                valid_rows, valid_cols, need_row_mask, need_col_mask,
                tile_rows, tile_cols, strip):
    r = pl.program_id(0)   # batch-tile index   ("parallel")
    c = pl.program_id(1)   # class-tile index   ("parallel"; per-(r,c) output block)

    nstrips = tile_rows // strip

    # (1, tile_cols) column-validity mask, built once per tile (hoisted out of
    # the strip loop); only materialized for ragged class counts.
    if need_col_mask:
        col_ids = c * tile_cols + lax.broadcasted_iota(jnp.int32, (1, tile_cols), 1)
        col_ok = col_ids < valid_cols
    else:
        col_ok = None

    y_dtype = y_ref.dtype

    def strip_body(s, acc):
        start = pl.multiple_of(s * strip, strip)
        x = x_ref[pl.ds(start, strip), :].astype(jnp.float32)
        yv = y_ref[pl.ds(start, strip), :]

        # y is a binarized multi-label vector; accept f32/bf16/int/bool storage.
        if y_dtype == jnp.bool_:
            is_pos = yv
        elif jnp.issubdtype(y_dtype, jnp.integer):
            is_pos = yv > 0
        else:
            is_pos = yv > 0.5

        # sigmoid as a single EUP push (tanh) + 2 VPU ops.
        xs_pos = 0.5 * jnp.tanh(0.5 * x) + 0.5
        xs_neg = 1.0 - xs_pos
        if clip is not None and clip > 0:
            # Asymmetric clipping (probability shifting) on the negative side.
            xs_neg = jnp.minimum(xs_neg + clip, 1.0)

        # y in {0,1}: y*log(p+) + (1-y)*log(p-) collapses to a select + one log.
        p = jnp.where(is_pos, xs_pos, xs_neg)
        loss = jnp.log(jnp.maximum(p, eps))

        # Asymmetric focusing weight: (1 - p)^gamma with per-branch constant gamma.
        if gamma_neg > 0 or gamma_pos > 0:
            base = 1.0 - p
            w = jnp.where(is_pos,
                          _const_pow(base, gamma_pos),
                          _const_pow(base, gamma_neg))
            loss = loss * w

        # Zero out padded tail rows/cols (also scrubs garbage from padded blocks).
        if need_row_mask or need_col_mask:
            ok = None
            if need_row_mask:
                row_ids = (r * tile_rows + start
                           + lax.broadcasted_iota(jnp.int32, (strip, 1), 0))
                ok = row_ids < valid_rows
            if need_col_mask:
                ok = col_ok if ok is None else (ok & col_ok)
            loss = jnp.where(ok, loss, 0.0)

        # Fold the strip's 8-row groups into the (8, tile_cols) accumulator:
        # tile-aligned static slices + VPU adds only (no XLU cross-lane reduce).
        folded = loss[0:8, :]
        for g in range(1, strip // 8):
            folded = folded + loss[g * 8:(g + 1) * 8, :]
        return acc + folded

    acc0 = jnp.zeros((8, tile_cols), jnp.float32)
    acc = lax.fori_loop(0, nstrips, strip_body, acc0, unroll=(nstrips <= 8))
    o_ref[...] = acc


def _auto_tiles(B, C, x_dtype, y_dtype, vmem_limit):
    """Largest (rows, cols) tile whose double-buffered inputs fit ~3/4 of the limit."""
    bx = jnp.dtype(x_dtype).itemsize
    by = jnp.dtype(y_dtype).itemsize
    tile_cols = min(_round_up(C, 128), _MAX_TILE_COLS)
    input_budget = (vmem_limit * 3) // 4          # rest: output dbl-buffer + strip temps
    per_row = tile_cols * (bx + by) * 2           # x + y, double-buffered
    max_rows = max(8, (input_budget // per_row) // 8 * 8)
    tile_rows = min(_round_up(B, 8), _MAX_TILE_ROWS, max_rows)
    return tile_rows, tile_cols


def asymmetric_loss(x, y, *, gamma_neg=GAMMA_NEG, gamma_pos=GAMMA_POS,
                    clip=CLIP, eps=EPS, tile_rows=None, tile_cols=None):
    """Scalar ASL loss, matching AsymmetricLossOptimized.forward for binary y."""
    assert x.shape == y.shape and x.ndim == 2
    B, C = x.shape

    vmem_limit = _vmem_limit_bytes()
    auto_r, auto_c = _auto_tiles(B, C, x.dtype, y.dtype, vmem_limit)
    if tile_rows is None:
        tile_rows = auto_r
    else:
        tile_rows = _round_up(min(tile_rows, _round_up(B, 8)), 8)
    if tile_cols is None:
        tile_cols = auto_c
    else:
        tile_cols = _round_up(min(tile_cols, _round_up(C, 128)), 128)

    # Make tile_rows a multiple of the strip so the inner loop tiles exactly.
    if tile_rows > _STRIP_ROWS:
        tile_rows = (tile_rows // _STRIP_ROWS) * _STRIP_ROWS
    strip = min(tile_rows, _STRIP_ROWS)

    grid_r = pl.cdiv(B, tile_rows)
    grid_c = pl.cdiv(C, tile_cols)
    need_row_mask = (B % tile_rows) != 0
    need_col_mask = (C % tile_cols) != 0

    kernel = functools.partial(
        _asl_kernel, gamma_neg=gamma_neg, gamma_pos=gamma_pos, clip=clip,
        eps=eps, valid_rows=B, valid_cols=C,
        need_row_mask=need_row_mask, need_col_mask=need_col_mask,
        tile_rows=tile_rows, tile_cols=tile_cols, strip=strip)

    partials = pl.pallas_call(
        kernel,
        out_shape=jax.ShapeDtypeStruct((grid_r * 8, grid_c * tile_cols), jnp.float32),
        grid_spec=pltpu.PrefetchScalarGridSpec(
            num_scalar_prefetch=0,
            grid=(grid_r, grid_c),
            in_specs=[
                pl.BlockSpec((tile_rows, tile_cols), lambda r, c: (r, c)),
                pl.BlockSpec((tile_rows, tile_cols), lambda r, c: (r, c)),
            ],
            # Each (r, c) step owns its own (8, tile_cols) partial-sum block:
            # no cross-step dependency, both grid axes shardable across TCs.
            out_specs=pl.BlockSpec((8, tile_cols), lambda r, c: (r, c)),
        ),
        compiler_params=pltpu.CompilerParams(
            dimension_semantics=("parallel", "parallel"),
            vmem_limit_bytes=vmem_limit,
        ),
    )(x, y)

    # Tiny final reduction (grid_r*8 x grid_c*tile_cols f32) + negate, outside
    # the kernel.
    return -jnp.sum(partials)


def _reference(x, y, *, gamma_neg=GAMMA_NEG, gamma_pos=GAMMA_POS, clip=CLIP, eps=EPS):
    """Direct JAX port of AsymmetricLossOptimized.forward (for validation)."""
    x = x.astype(jnp.float32)
    y = y.astype(jnp.float32)
    xs_pos = jax.nn.sigmoid(x)
    xs_neg = 1.0 - xs_pos
    if clip is not None and clip > 0:
        xs_neg = jnp.minimum(xs_neg + clip, 1.0)
    loss = y * jnp.log(jnp.maximum(xs_pos, eps))
    loss = loss + (1 - y) * jnp.log(jnp.maximum(xs_neg, eps))
    if gamma_neg > 0 or gamma_pos > 0:
        w = jnp.power(1 - xs_pos * y - xs_neg * (1 - y),
                      gamma_pos * y + gamma_neg * (1 - y))
        loss = loss * w
    return -jnp.sum(loss)


# TODO(synk): disable_torch_grad_focal_loss only toggles autograd through the focal
# weight in PyTorch; it has no effect on the forward value, so it is not modeled here.

if __name__ == "__main__":
    key = jax.random.PRNGKey(0)
    kx, ky = jax.random.split(key)
    # Small multi-label head: [batch, num_classes]; intentionally ragged so the
    # tail-block masking path is exercised.
    B, C = 60, 300
    x = jax.random.normal(kx, (B, C), dtype=jnp.float32)
    y = (jax.random.uniform(ky, (B, C)) > 0.5).astype(jnp.float32)

    ref = _reference(x, y)

    # Forced small tiles -> multi-step (2 x 3) grid: exercises per-(r,c) output
    # blocks, the strip loop and tail masking.
    out_tiled = jax.block_until_ready(asymmetric_loss(x, y, tile_rows=32, tile_cols=128))
    # Default auto-sized tiles (single padded block here).
    out_auto = jax.block_until_ready(asymmetric_loss(x, y))
    # Narrow-dtype targets (binary, exactly representable): mem-traffic saver path.
    out_bf16y = jax.block_until_ready(asymmetric_loss(x, y.astype(jnp.bfloat16)))

    # Exactly-tiling shape: no masking path at all.
    B2, C2 = 16, 256
    x2 = jax.random.normal(jax.random.PRNGKey(1), (B2, C2), dtype=jnp.float32)
    y2 = (jax.random.uniform(jax.random.PRNGKey(2), (B2, C2)) > 0.5).astype(jnp.float32)
    ref2 = _reference(x2, y2)
    out2 = jax.block_until_ready(asymmetric_loss(x2, y2))

    assert jnp.allclose(out_tiled, ref, rtol=1e-4, atol=1e-3), (out_tiled, ref)
    assert jnp.allclose(out_auto, ref, rtol=1e-4, atol=1e-3), (out_auto, ref)
    assert jnp.allclose(out_bf16y, ref, rtol=1e-4, atol=1e-3), (out_bf16y, ref)
    assert jnp.allclose(out2, ref2, rtol=1e-4, atol=1e-3), (out2, ref2)
    print("KERNEL_OK")
</pallas_src>

<mosaic_0001>
module attributes {stable_mosaic.version = 11 : i64} {
  func.func @_asl_kernel(%arg0: i32, %arg1: i32, %arg2: memref<32x128xf32, #tpu.memory_space<vmem>>, %arg3: memref<32x128xf32, #tpu.memory_space<vmem>>, %arg4: memref<8x128xf32, #tpu.memory_space<vmem>>) attributes {dimension_semantics = [#tpu.dimension_semantics<parallel>, #tpu.dimension_semantics<parallel>], iteration_bounds = array<i64: 2, 3>, scalar_prefetch = 0 : i64, scratch_operands = 0 : i64, tpu.core_type = #tpu.core_type<tc>, window_params = [{transform_indices = @transform_0, window_bounds = array<i64: 32, 128>}, {transform_indices = @transform_1, window_bounds = array<i64: 32, 128>}, {transform_indices = @transform_2, window_bounds = array<i64: 8, 128>}]} {
    %c128_i32 = arith.constant 128 : i32
    %0 = arith.muli %arg1, %c128_i32 : i32
    %1 = tpu.iota {dimensions = array<i32: 1>} : vector<1x128xi32>
    %2 = vector.broadcast %0 : i32 to vector<1x128xi32>
    %3 = arith.addi %2, %1 : vector<1x128xi32>
    %c300_i32 = arith.constant 300 : i32
    %4 = vector.broadcast %c300_i32 : i32 to vector<1x128xi32>
    %5 = arith.cmpi slt, %3, %4 : vector<1x128xi32>
    %cst = arith.constant 0.000000e+00 : f32
    %6 = vector.broadcast %cst : f32 to vector<8x128xf32>
    %c0_i32 = arith.constant 0 : i32
    %c32_i32 = arith.constant 32 : i32
    %7 = arith.muli %c0_i32, %c32_i32 : i32
    %8 = tpu.assume_multiple %7, 32 : i32
    %9 = arith.index_cast %8 : i32 to index
    %c0 = arith.constant 0 : index
    %10 = vector.load %arg2[%9, %c0] : memref<32x128xf32, #tpu.memory_space<vmem>>, vector<32x128xf32>
    %11 = arith.index_cast %8 : i32 to index
    %c0_0 = arith.constant 0 : index
    %12 = vector.load %arg3[%11, %c0_0] : memref<32x128xf32, #tpu.memory_space<vmem>>, vector<32x128xf32>
    %cst_1 = arith.constant 5.000000e-01 : f32
    %13 = vector.broadcast %cst_1 : f32 to vector<32x128xf32>
    %14 = arith.cmpf ogt, %12, %13 : vector<32x128xf32>
    %cst_2 = arith.constant 5.000000e-01 : f32
    %15 = vector.broadcast %cst_2 : f32 to vector<32x128xf32>
    %16 = arith.mulf %15, %10 : vector<32x128xf32>
    %17 = math.tanh %16 : vector<32x128xf32>
    %cst_3 = arith.constant 5.000000e-01 : f32
    %18 = vector.broadcast %cst_3 : f32 to vector<32x128xf32>
    %19 = arith.mulf %18, %17 : vector<32x128xf32>
    %cst_4 = arith.constant 5.000000e-01 : f32
    %20 = vector.broadcast %cst_4 : f32 to vector<32x128xf32>
    %21 = arith.addf %19, %20 : vector<32x128xf32>
    %cst_5 = arith.constant 1.000000e+00 : f32
    %22 = vector.broadcast %cst_5 : f32 to vector<32x128xf32>
    %23 = arith.subf %22, %21 : vector<32x128xf32>
    %cst_6 = arith.constant 5.000000e-02 : f32
    %24 = vector.broadcast %cst_6 : f32 to vector<32x128xf32>
    %25 = arith.addf %23, %24 : vector<32x128xf32>
    %cst_7 = arith.constant 1.000000e+00 : f32
    %26 = vector.broadcast %cst_7 : f32 to vector<32x128xf32>
    %27 = arith.minimumf %25, %26 : vector<32x128xf32>
    %28 = arith.select %14, %21, %27 : vector<32x128xi1>, vector<32x128xf32>
    %cst_8 = arith.constant 9.99999993E-9 : f32
    %29 = vector.broadcast %cst_8 : f32 to vector<32x128xf32>
    %30 = arith.maximumf %28, %29 : vector<32x128xf32>
    %31 = math.log %30 : vector<32x128xf32>
    %cst_9 = arith.constant 1.000000e+00 : f32
    %32 = vector.broadcast %cst_9 : f32 to vector<32x128xf32>
    %33 = arith.subf %32, %28 : vector<32x128xf32>
    %34 = arith.mulf %33, %33 : vector<32x128xf32>
    %35 = arith.mulf %34, %34 : vector<32x128xf32>
    %36 = arith.select %14, %33, %35 : vector<32x128xi1>, vector<32x128xf32>
    %37 = arith.mulf %31, %36 : vector<32x128xf32>
    %c32_i32_10 = arith.constant 32 : i32
    %38 = arith.muli %arg0, %c32_i32_10 : i32
    %39 = arith.addi %38, %8 : i32
    %40 = tpu.iota {dimensions = array<i32: 0>} : vector<32x1xi32>
    %41 = vector.broadcast %39 : i32 to vector<32x1xi32>
    %42 = arith.addi %41, %40 : vector<32x1xi32>
    %c60_i32 = arith.constant 60 : i32
    %43 = vector.broadcast %c60_i32 : i32 to vector<32x1xi32>
    %44 = arith.cmpi slt, %42, %43 : vector<32x1xi32>
    %45 = vector.broadcast %44 : vector<32x1xi1> to vector<32x128xi1>
    %46 = vector.broadcast %5 : vector<1x128xi1> to vector<32x128xi1>
    %47 = arith.andi %45, %46 : vector<32x128xi1>
    %cst_11 = arith.constant 0.000000e+00 : f32
    %48 = vector.broadcast %cst_11 : f32 to vector<32x128xf32>
    %49 = arith.select %47, %37, %48 : vector<32x128xi1>, vector<32x128xf32>
    %50 = vector.extract_strided_slice %49 {offsets = [0, 0], sizes = [8, 128], strides = [1, 1]} : vector<32x128xf32> to vector<8x128xf32>
    %51 = vector.extract_strided_slice %49 {offsets = [8, 0], sizes = [8, 128], strides = [1, 1]} : vector<32x128xf32> to vector<8x128xf32>
    %52 = arith.addf %50, %51 : vector<8x128xf32>
    %53 = vector.extract_strided_slice %49 {offsets = [16, 0], sizes = [8, 128], strides = [1, 1]} : vector<32x128xf32> to vector<8x128xf32>
    %54 = arith.addf %52, %53 : vector<8x128xf32>
    %55 = vector.extract_strided_slice %49 {offsets = [24, 0], sizes = [8, 128], strides = [1, 1]} : vector<32x128xf32> to vector<8x128xf32>
    %56 = arith.addf %54, %55 : vector<8x128xf32>
    %57 = arith.addf %6, %56 : vector<8x128xf32>
    %c1_i32 = arith.constant 1 : i32
    %c0_12 = arith.constant 0 : index
    %c0_13 = arith.constant 0 : index
    %58 = vector.load %arg4[%c0_12, %c0_13] : memref<8x128xf32, #tpu.memory_space<vmem>>, vector<8x128xf32>
    tpu.vector_store %arg4[%c0_12, %c0_13], %57 {strides = array<i32>} : memref<8x128xf32, #tpu.memory_space<vmem>>, vector<8x128xf32>,
    return
  }
  func.func @transform_0(%arg0: i32, %arg1: i32) -> (i32, i32) {
    %c0_i32 = arith.constant 0 : i32
    return %arg0, %arg1 : i32, i32
  }
  func.func @transform_1(%arg0: i32, %arg1: i32) -> (i32, i32) {
    %c0_i32 = arith.constant 0 : i32
    return %arg0, %arg1 : i32, i32
  }
  func.func @transform_2(%arg0: i32, %arg1: i32) -> (i32, i32) {
    %c0_i32 = arith.constant 0 : i32
    return %arg0, %arg1 : i32, i32
  }
}

</mosaic_0001>

<bundles_post_ra>
// kernel: tpu_custom_call.1
= control target key start
LH: loop header
LB: loop body
LE: loop exit
PB: predicated region body
PF: predicated region fallthrough
CT: control target
= control target key end

     0   :  { %s1091_s0 = inlined_call_operand.hbm [shape: f32[60,300], index: 0, kind: input, shape index: {}]   ;;  %s1092_s1 = inlined_call_operand.hbm [shape: f32[60,300], index: 1, kind: input, shape index: {}]   ;;  %s1093_s2 = inlined_call_operand.hbm [shape: f32[16,384], index: 2, kind: output, shape index: {}]  }
   0x1   :  { %1099 = sst [smem:[#allocation13_spill]] %s1091_s0 }
   0x2   :  { %7 = vsyncpa [#allocation3], 0 }
   0x3   :  { %9 = vsyncpa [#allocation3 + $0x1], 0 }
   0x4   :  { %10 = vsyncpa [#allocation6], 0 }
   0x5   :  { %12 = vsyncpa [#allocation6 + $0x1], 0 }
   0x6   :  { %13 = vsyncpa [#allocation4], 0 }
   0x7   :  { %15 = vsyncpa [#allocation4 + $0x1], 0  ;;  %s785_s9 = smov 0   ;;  %s787_s10 = smov 0  }
   0x8   :  { %s789_s11 = smov 0   ;;  %s791_s12 = smov 0  }
   0x9   :  { %s793_s13 = smov 0   ;;  %s795_s14 = smov 0  }
   0xa   :  { %s797_s15 = smov 0   ;;  %s799_s16 = smov 0  }
   0xb LB: > { %s473_s17 = sadd.s32 4294967295, %s762_s16   ;;  %s474_s18 = sadd.s32 4294967294, %s762_s16   ;;  %s762_s16 = sphi %s799_s16, %s21_s16   ;;  %s758_s15 = sphi %s797_s15, %s1123_s15   ;;  %s754_s14 = sphi %s795_s14, %s1122_s14   ;;  %s750_s13 = sphi %s793_s13, %s1121_s13   ;;  %s746_s12 = sphi %s791_s12, %s1120_s12   ;;  %s742_s11 = sphi %s789_s11, %s1119_s11   ;;  %s738_s10 = sphi %s787_s10, %s1118_s10   ;;  %s734_s9 = sphi %s785_s9, %s1117_s9  }
   0xc   : > { %s30_s19 = sadd.s32 1, %s754_s14  ;;  %s33_s20 = sadd.s32 1, %s758_s15 }
   0xd   : > { %p31_p0 = scmp.ge.s32.totalorder %s30_s19, 3  ;;  %s42_s21 = sadd.s32 1, %s742_s11 }
   0xe   : > { %p49_p1 = scmp.ne.s32.totalorder %s742_s11, %s738_s10  ;;  %p50_p2 = scmp.eq.s32.totalorder %s762_s16, 0 }
   0xf   : > { %s1125_s19 = smov (%p31_p0, %s30_s19), 0  ;;  %s1127_s20 = smov (!%p31_p0, %s33_s20), %s758_s15 }
  0x10   : > { %1100 = sst [smem:[#allocation11_spill]] %s1125_s19  ;;  %s38_s22 = ssub.s32 %s754_s14, %s1125_s19 }
  0x11   : > { %p838_p3 = por %p50_p2, %p49_p1  ;;  %p35_p4 = scmp.ge.s32.totalorder %s1127_s20, 2 }
  0x12   : > { %p55_p5 = scmp.ne.s32.totalorder %s738_s10, %s734_s9  ;;  %p56_p6 = scmp.eq.s32.totalorder %s473_s17, 0 }
  0x13   : > { %p109_p7 = scmp.eq.s32.totalorder %s473_s17, 5  ;;  %s1129_s20 = smov (%p35_p4, %s1127_s20), 0 }
  0x14   : > { %1102 = sst [smem:[#allocation12_spill]] %s1129_s20  ;;  %p846_p8 = por %p56_p6, %p55_p5 }
  0x15   : > { %p850_p9 = por %p109_p7, %p49_p1  ;;  %s37_s26 = ssub.s32 %s758_s15, %s1129_s20 }
  0x16   : > { %s1103_s24 = scalar_select %p846_p8, 1, 0 }
  0x17   : > { %s1104_s25 = scalar_select %p850_p9, 1, 0 }
  0x18   : > { %p115_p10 = scmp.eq.s32.totalorder %s474_s18, 5  ;;  %s39_s27 = sor.u32 %s38_s22, %s37_s26 }
  0x19   : > { %p40_p11 = scmp.eq.s32.totalorder %s39_s27, 0  ;;  %p515_p13 = scmp.lt.s32.totalorder %s762_s16, 6 }
  0x1a   : > { %p856_p12 = por %p115_p10, %p55_p5  ;;  %s862_s29 = sand.u32 1, %s742_s11  }
  0x1b   : > { %s865_s30 = scalar_select %p40_p11, %s742_s11, %s42_s21  }
  0x1c   : > { %s1105_s28 = scalar_select %p856_p12, 1, 0 }
  0x1d   : > { %s1094_s3 = sshll.u32 %s862_s29, 5  ;;  %s495_s4 = smul.u32 12, %s758_s15 }
  0x1e   : > { %s139_s5 = scalar_lea.vmem [#allocation2], %s1094_s3  ;;  %p873_p0 = pnand %p515_p13, %p838_p3 }
  0x1f   : > { %s148_s6 = sshll.u32 %s139_s5, 4  ;;  %s878_s8 = sadd.s32 %s754_s14, %s495_s4  ;;  %s880_s6 = int_to_ptr.vmem [resolvable:$true] %s148_s6 }
  0x20   : > { %s480_s17 = sshll.u32 %s878_s8, 7  ;;  %s1107_s0 = sld [smem:[#allocation13_spill]] }
  0x21   : > { %s136_s23 = scalar_lea.sflag [#allocation3], %s862_s29  ;;  %p602_p2 = pneg %p873_p0 }
  0x26   : > { %s888_s22 = scalar_lea.hbm %s1107_s0, %s480_s17  ;;  %s605_s5 = scalar_lea.hbm %s1107_s0, 3072 }
  0x27   : > { %s600_s26 = scalar_lea.hbm %s888_s22, 512  ;;  %p606_p5 = scmp.lt.u32.totalorder %s888_s22, %s1107_s0 }
  0x28   : > { %p601_p1 = scmp.ne.s32.totalorder %s888_s22, %s600_s26  ;;  %p607_p6 = scmp.lt.u32.totalorder %s605_s5, %s600_s26 }
  0x29   : > { %p609_p10 = scmp.lt.u32.totalorder %s600_s26, %s888_s22 }
  0x2a   : > { %p603_p3 = pnand %p602_p2, %p601_p1  ;;  %p608_p7 = por %p607_p6, %p606_p5 }
  0x2c   : > { %p604_p4 = pneg %p603_p3  ;;  %p610_p11 = por %p609_p10, %p608_p7 }
  0x2e   : > { %p611_p13 = pnand %p610_p11, %p604_p4 }
  0x30   : > { %614 = shalt.err (!%p611_p13)
}
  0x31   : > { %s615_s3 = scalar_lea.vmem %s880_s6, 512  ;;  %s764_s27 = smov [#allocation2]  }
  0x32   : > { %p616_p1 = scmp.ne.s32.totalorder %s880_s6, %s615_s3  ;;  %s620_s4 = sshll.u32 %s764_s27, 4  ;;  %s621_s4 = int_to_ptr.vmem [resolvable:$false] %s620_s4 }
  0x33   : > { %s622_s18 = scalar_lea.vmem %s621_s4, 1024  ;;  %p623_p9 = scmp.lt.s32.totalorder %s880_s6, %s621_s4 }
  0x34   : > { %p618_p3 = pnand %p616_p1, %p602_p2  ;;  %p624_p5 = scmp.lt.s32.totalorder %s622_s18, %s615_s3 }
  0x36   : > { %p619_p12 = pneg %p618_p3  ;;  %p625_p6 = por %p624_p5, %p623_p9 }
  0x38   : > { %p626_p7 = pnand %p625_p6, %p619_p12 }
  0x3a   : > { %629 = shalt.err (!%p626_p7)
}
  0x3b   : > { %s765_s26 = smov 384   ;;  %s766_s5 = smov 128  }
  0x3c   : > { %s767_s21 = smov 8   ;;  %p485_p9 = scmp.ge.s32.totalorder %s762_s16, 1 }
  0x3d   : > { %507 = dma.hbm_to_vmem [thread:$0]  (!%p873_p0), %s888_s22, 512, %s880_s6, %s136_s23, %s765_s26, %s766_s5, %s767_s21  }
  0x3e   : > { %p179_p12 = scmp.lt.s32.totalorder %s762_s16, 7  ;;  %s932_s18 = scalar_lea.hbm %s1092_s1, %s480_s17 }
  0x3f   : > { %s1109_s0 = sshll.u32 %s862_s29, 5  ;;  %s159_s6 = scalar_lea.sflag [#allocation6], %s862_s29 }
  0x40   : > { %p923_p4 = pnand %p485_p9, %p179_p12  ;;  %s162_s20 = scalar_lea.vmem [#allocation5], %s1109_s0 }
  0x41   : > { %s171_s19 = sshll.u32 %s162_s20, 4  ;;  %s630_s22 = scalar_lea.hbm %s932_s18, 512  ;;  %s936_s19 = int_to_ptr.vmem [resolvable:$true] %s171_s19 }
  0x42   : > { %p631_p10 = scmp.ne.s32.totalorder %s932_s18, %s630_s22  ;;  %s635_s17 = scalar_lea.hbm %s1092_s1, 3072 }
  0x43   : > { %p636_p1 = scmp.lt.u32.totalorder %s932_s18, %s1092_s1  ;;  %p637_p3 = scmp.lt.u32.totalorder %s635_s17, %s630_s22 }
  0x44   : > { %p633_p11 = pnand %p631_p10, %p602_p2  ;;  %p639_p6 = scmp.lt.u32.totalorder %s630_s22, %s932_s18 }
  0x45   : > { %p638_p5 = por %p637_p3, %p636_p1 }
  0x46   : > { %p634_p13 = pneg %p633_p11 }
  0x47   : > { %p640_p7 = por %p639_p6, %p638_p5 }
  0x49   : > { %p641_p9 = pnand %p640_p7, %p634_p13 }
  0x4b   : > { %644 = shalt.err (!%p641_p9)
}
  0x4c   : > { %s645_s0 = scalar_lea.vmem %s936_s19, 512  ;;  %s768_s20 = smov [#allocation5]  }
  0x4d   : > { %p646_p12 = scmp.ne.s32.totalorder %s936_s19, %s645_s0  ;;  %s650_s8 = sshll.u32 %s768_s20, 4  ;;  %s651_s8 = int_to_ptr.vmem [resolvable:$false] %s650_s8 }
  0x4e   : > { %s652_s23 = scalar_lea.vmem %s651_s8, 1024  ;;  %p653_p8 = scmp.lt.s32.totalorder %s936_s19, %s651_s8 }
  0x4f   : > { %p648_p10 = pnand %p646_p12, %p602_p2  ;;  %p654_p1 = scmp.lt.s32.totalorder %s652_s23, %s645_s0 }
  0x51   : > { %p649_p11 = pneg %p648_p10  ;;  %p655_p3 = por %p654_p1, %p653_p8 }
  0x53   : > { %p656_p5 = pnand %p655_p3, %p649_p11 }
  0x55   : > { %659 = shalt.err (!%p656_p5)
}
  0x56   : > { %510 = dma.hbm_to_vmem [thread:$0]  (!%p873_p0), %s932_s18, 512, %s936_s19, %s159_s6, %s765_s26, %s766_s5, %s767_s21  }
  0x57   : > { %183 = sbr.rel (%p923_p4) target bundleno = 161 (0xa1), region = 28  ;;  %s970_s22 = sand.u32 (!%p923_p4), 1, %s738_s10  }
  0x58   : > { %s486_s17 = sshll.u32 (!%p923_p4), %s970_s22, 5  ;;  %s186_s27 = scalar_lea.sflag (!%p923_p4), [#allocation3], %s970_s22 }
  0x59   : > { %s189_s7 = scalar_lea.vmem (!%p923_p4), [#allocation2], %s486_s17  ;;  %p1110_p8 = scmp.ne.s32.totalorder (!%p923_p4), %s1103_s24, 0 }
  0x5e   : > { %721 = dma.done.wait (%p1110_p8), %s186_s27, 512  }
  0x5f   : > { %723 = vsyncadd (%p1110_p8), %s186_s27, 4294966784  ;;  %s195_s19 = scalar_lea.sflag [#allocation6], %s970_s22  ;;  %s979_s29 = scalar_lea.vmem [#allocation5], %s486_s17 }
  0x60   : > { %725 = dma.done.wait (%p1110_p8), %s195_s19, 512  }
  0x61   : > { %727 = vsyncadd (%p1110_p8), %s195_s19, 4294966784  ;;  %v232_v0 = vld [vmem:[%s189_s7] sm:$0xff]  ;;  %v233_v1 = vld [vmem:[%s189_s7 + $0x8] sm:$0xff]  ;;  %v227_v24 = vlaneseq  ;;  %s489_s24 = sshll.u32 %s746_s12, 7  ;;  %s490_s26 = sshll.u32 %s750_s13, 5 }
  0x62   : > { %v234_v2 = vld [vmem:[%s189_s7 + $0x10] sm:$0xff]  ;;  %v235_v3 = vld [vmem:[%s189_s7 + $0x18] sm:$0xff]  ;;  %v244_v4 = vmul.f32 0.5, %v232_v0  ;;  %v245_v5 = vmul.f32 0.5, %v233_v1  ;;  %v986_v18 = vld [vmem:[%s979_s29] sm:$0xff]  ;;  %v229_v42 = vstv %s489_s24  ;;  %s497_s5 = smul.u32 3, %s750_s13 }
  0x63   : > { %v246_v6 = vmul.f32 0.5, %v234_v2  ;;  %v247_v7 = vmul.f32 0.5, %v235_v3  ;;  %v989_v21 = vld [vmem:[%s979_s29 + $0x8] sm:$0xff]  ;;  %v992_v25 = vld [vmem:[%s979_s29 + $0x10] sm:$0xff]  ;;  %v995_v28 = vld [vmem:[%s979_s29 + $0x18] sm:$0xff]  ;;  %vm240_vm0 = vcmp.gt.f32.partialorder %v986_v18, 0.5  ;;  %v315_v54 = vstv %s490_s26 }
  0x64   : > { %584 = vtanh.f32 %v244_v4  ;;  %vm241_vm1 = vcmp.gt.f32.partialorder %v989_v21, 0.5  ;;  %vm242_vm2 = vcmp.gt.f32.partialorder %v992_v25, 0.5  ;;  %vm243_vm3 = vcmp.gt.f32.partialorder %v995_v28, 0.5  ;;  %s488_s21 = sshll.u32 %s970_s22, 3  ;;  %s359_s13 = sadd.s32 %s746_s12, %s497_s5 }
  0x65   : > { %586 = vtanh.f32 %v245_v5  ;;  %v311_v37 = vshrl.u32 %v227_v24, 7  ;;  %v228_v49 = vand.u32 127, %v227_v24  ;;  %s223_s3 = scalar_lea.vmem [#allocation7], %s488_s21  ;;  %s492_s6 = sshll.u32 %s359_s13, 7 }
  0x66   : > { %588 = vtanh.f32 %v246_v6  ;;  %s363_s18 = sshll.u32 %s223_s3, 4  ;;  %s1039_s12 = scalar_lea.hbm %s1093_s2, %s492_s6  ;;  %s1034_s18 = int_to_ptr.vmem [resolvable:$true] %s363_s18 }
  0x67   : > { %590 = vtanh.f32 %v247_v7  ;;  %v312_v53 = vadd.s32 8, %v311_v37  ;;  %v313_v56 = vadd.s32 16, %v311_v37  ;;  %v314_v58 = vadd.s32 24, %v311_v37  ;;  %s348_s20 = scalar_lea.sflag [#allocation4], %s970_s22  ;;  %s660_s8 = scalar_lea.vmem %s1034_s18, 128 }
  0x68   : > { %v230_v59 = vadd.s32 %v229_v42, %v228_v49  ;;  %v316_v61 = vadd.s32 %v315_v54, %v311_v37  ;;  %p661_p0 = scmp.ne.s32.totalorder %s1034_s18, %s660_s8  ;;  %p1113_p2 = scmp.ne.s32.totalorder %s1104_s25, 0 }
  0x69   : > { %v317_v63 = vadd.s32 %v315_v54, %v312_v53  ;;  %v318_v1 = vadd.s32 %v315_v54, %v313_v56  ;;  %v319_v3 = vadd.s32 %v315_v54, %v314_v58  ;;  %s769_s23 = smov [#allocation7]  }
  0x6a   : > { %vm231_vm4 = vcmp.lt.s32.totalorder %v230_v59, 300  ;;  %vm320_vm5 = vcmp.lt.s32.totalorder %v316_v61, 60  ;;  %p662_p4 = pnand %p661_p0, %p1113_p2  ;;  %s664_s17 = sshll.u32 %s769_s23, 4  ;;  %s665_s17 = int_to_ptr.vmem [resolvable:$false] %s664_s17 }
  0x6b   : > { %vm321_vm6 = vcmp.lt.s32.totalorder %v317_v63, 60  ;;  %vm322_vm7 = vcmp.lt.s32.totalorder %v318_v1, 60  ;;  %vm323_vm8 = vcmp.lt.s32.totalorder %v319_v3, 60  ;;  %vm1020_vm9 = vmand %vm320_vm5, %vm231_vm4  ;;  %s666_s27 = scalar_lea.vmem %s665_s17, 256  ;;  %p667_p6 = scmp.lt.s32.totalorder %s1034_s18, %s665_s17 }
  0x6c   : > { %vm335_vm10 = vmand %vm321_vm6, %vm231_vm4  ;;  %p663_p13 = pneg %p662_p4  ;;  %p668_p7 = scmp.lt.s32.totalorder %s666_s27, %s660_s8 }
  0x6d   : > { %vm336_vm11 = vmand %vm322_vm7, %vm231_vm4 }
  0x6e   : > { %v585_v8 = vpop.eup %584  ;;  %vm337_vm12 = vmand %vm323_vm8, %vm231_vm4  ;;  %p669_p9 = por %p668_p7, %p667_p6 }
  0x6f   : > { %v587_v9 = vpop.eup %586  ;;  %v252_v10 = vmul.f32 0.5, %v585_v8 }
  0x70   : > { %v589_v11 = vpop.eup %588  ;;  %v253_v12 = vmul.f32 0.5, %v587_v9  ;;  %p670_p12 = pnand %p669_p9, %p663_p13 }
  0x71   : > { %v591_v13 = vpop.eup %590  ;;  %v254_v14 = vmul.f32 0.5, %v589_v11  ;;  %v256_v15 = vadd.f32 0.5, %v252_v10 }
  0x72   : > { %v255_v16 = vmul.f32 0.5, %v591_v13  ;;  %v257_v17 = vadd.f32 0.5, %v253_v12 }
  0x73   : > { %v258_v19 = vadd.f32 0.5, %v254_v14  ;;  %v260_v20 = vsub.f32 1.0, %v256_v15 }
  0x74   : > { %v259_v22 = vadd.f32 0.5, %v255_v16  ;;  %v261_v23 = vsub.f32 1.0, %v257_v17 }
  0x75   : > { %v262_v26 = vsub.f32 1.0, %v258_v19  ;;  %v264_v27 = vadd.f32 0.05, %v260_v20 }
  0x76   : > { %v263_v29 = vsub.f32 1.0, %v259_v22  ;;  %v265_v30 = vadd.f32 0.05, %v261_v23 }
  0x77   : > { %v266_v31 = vadd.f32 0.05, %v262_v26  ;;  %v268_v32 = vmin.f32 %v264_v27, 1.0 }
  0x78   : > { %v267_v33 = vadd.f32 0.05, %v263_v29  ;;  %v269_v34 = vmin.f32 %v265_v30, 1.0 }
  0x79   : > { %v270_v35 = vmin.f32 %v266_v31, 1.0  ;;  %v272_v36 = vsel %vm240_vm0, %v256_v15, %v268_v32 }
  0x7a   : > { %v271_v38 = vmin.f32 %v267_v33, 1.0  ;;  %v273_v39 = vsel %vm241_vm1, %v257_v17, %v269_v34  ;;  %v276_v40 = vmax.f32 %v272_v36, 1e-08  ;;  %v288_v41 = vsub.f32 1.0, %v272_v36 }
  0x7b   : > { %v274_v43 = vsel %vm242_vm2, %v258_v19, %v270_v35  ;;  %v277_v44 = vmax.f32 %v273_v39, 1e-08  ;;  %v289_v45 = vsub.f32 1.0, %v273_v39 }
  0x7c   : > { %v275_v46 = vsel %vm243_vm3, %v259_v22, %v271_v38  ;;  %v278_v47 = vmax.f32 %v274_v43, 1e-08  ;;  %592 = vlog2.f32 %v276_v40  ;;  %v290_v48 = vsub.f32 1.0, %v274_v43 }
  0x7d   : > { %v279_v50 = vmax.f32 %v275_v46, 1e-08  ;;  %594 = vlog2.f32 %v277_v44  ;;  %v291_v51 = vsub.f32 1.0, %v275_v46  ;;  %v292_v52 = vmul.f32 %v288_v41, %v288_v41 }
  0x7e   : > { %596 = vlog2.f32 %v278_v47  ;;  %v293_v55 = vmul.f32 %v289_v45, %v289_v45  ;;  %v294_v57 = vmul.f32 %v290_v48, %v290_v48 }
  0x7f   : > { %598 = vlog2.f32 %v279_v50  ;;  %v295_v60 = vmul.f32 %v291_v51, %v291_v51  ;;  %v296_v62 = vmul.f32 %v292_v52, %v292_v52 }
  0x80   : > { %v297_v0 = vmul.f32 %v293_v55, %v293_v55  ;;  %v298_v2 = vmul.f32 %v294_v57, %v294_v57 }
  0x81   : > { %v299_v4 = vmul.f32 %v295_v60, %v295_v60  ;;  %v300_v6 = vsel %vm240_vm0, %v288_v41, %v296_v62 }
  0x82   : > { %v301_v9 = vsel %vm241_vm1, %v289_v45, %v297_v0  ;;  %v302_v12 = vsel %vm242_vm2, %v290_v48, %v298_v2 }
  0x83   : > { %v303_v16 = vsel %vm243_vm3, %v291_v51, %v299_v4 }
  0x86   : > { %v593_v5 = vpop.eup %592 }
  0x87   : > { %v595_v7 = vpop.eup %594  ;;  %v281_v8 = vmul.f32 0.6931472, %v593_v5 }
  0x88   : > { %v597_v10 = vpop.eup %596  ;;  %v283_v11 = vmul.f32 0.6931472, %v595_v7 }
  0x89   : > { %v599_v14 = vpop.eup %598  ;;  %v285_v15 = vmul.f32 0.6931472, %v597_v10  ;;  %v304_v17 = vmul.f32 %v300_v6, %v281_v8 }
  0x8a   : > { %v287_v18 = vmul.f32 0.6931472, %v599_v14  ;;  %v305_v19 = vmul.f32 %v301_v9, %v283_v11 }
  0x8b   : > { %v306_v20 = vmul.f32 %v302_v12, %v285_v15  ;;  %v338_v21 = vsel %vm1020_vm9, %v304_v17, 0.0 }
  0x8c   : > { %v307_v22 = vmul.f32 %v303_v16, %v287_v18  ;;  %v339_v23 = vsel %vm335_vm10, %v305_v19, 0.0 }
  0x8d   : > { %v340_v24 = vsel %vm336_vm11, %v306_v20, 0.0  ;;  %v342_v25 = vadd.f32 %v339_v23, %v338_v21 }
  0x8e   : > { %v341_v26 = vsel %vm337_vm12, %v307_v22, 0.0 }
  0x8f   : > { %v343_v27 = vadd.f32 %v342_v25, %v340_v24 }
  0x91   : > { %v344_v28 = vadd.f32 %v343_v27, %v341_v26 }
  0x93   : > { %346 = vst [vmem:[%s223_s3] sm:$0xff] %v344_v28 }
  0x94   : > { %673 = shalt.err (!%p670_p12)
}
  0x95   : > { %s674_s22 = scalar_lea.hbm %s1039_s12, 128  ;;  %s678_s29 = scalar_lea.hbm %s1093_s2, 768 }
  0x96   : > { %p675_p10 = scmp.ne.s32.totalorder %s1039_s12, %s674_s22  ;;  %p679_p3 = scmp.lt.u32.totalorder %s1039_s12, %s1093_s2 }
  0x97   : > { %p680_p5 = scmp.lt.u32.totalorder %s678_s29, %s674_s22  ;;  %p682_p0 = scmp.lt.u32.totalorder %s674_s22, %s1039_s12 }
  0x98   : > { %p676_p11 = pnand %p675_p10, %p1113_p2 }
  0x99   : > { %p681_p8 = por %p680_p5, %p679_p3 }
  0x9a   : > { %p677_p1 = pneg %p676_p11 }
  0x9b   : > { %p683_p4 = por %p682_p0, %p681_p8 }
  0x9d   : > { %p684_p13 = pnand %p683_p4, %p677_p1 }
  0x9f   : > { %687 = shalt.err (!%p684_p13)
}
  0xa0   : > { %502 = dma.vmem_to_hbm [thread:$0]  (%p1113_p2), %s1034_s18, 128, %s1039_s12, %s348_s20  }
  0xa1 PF: > { %p516_p6 = scmp.ge.s32.totalorder %s762_s16, 2  ;;  %s375_s5 = sand.u32 1, %s734_s9  }
  0xa2   : > { %p1114_p7 = scmp.ne.s32.totalorder %s1105_s28, 0  ;;  %s376_s21 = scalar_lea.sflag [#allocation4], %s375_s5 }
  0xa4   : > { %p512_p9 = pnand %p516_p6, %p1114_p7 }
  0xa6   : > { %729 = dma.done.wait (!%p512_p9), %s376_s21, 128  }
  0xa7   : > { %731 = vsyncadd (!%p512_p9), %s376_s21, 4294967168  ;;  %s21_s16 = sadd.s32 1, %s762_s16   ;;  %s1115_s25 = sld [smem:[#allocation11_spill]] }
  0xa8   : > { %p18_p12 = scmp.ge.s32.totalorder %s21_s16, 8   ;;  %s1116_s3 = sld [smem:[#allocation12_spill]] }
  0xa9   : > { %s1117_s9 = smov %s738_s10  ;;  %s1118_s10 = smov %s742_s11 }
  0xaa   : > { %s1119_s11 = smov %s865_s30  ;;  %s1120_s12 = smov %s754_s14 }
  0xab   : > { %s1121_s13 = smov %s758_s15  ;;  %20 = sbr.rel (!%p18_p12) target bundleno = 11 (0xb), region = 86 }
  0xad   : > { %s1122_s14 = smov %s1115_s25 }
  0xae   : > { %s1123_s15 = smov %s1116_s3 }
  0xb2   :  { %381 = vsyncpa [#allocation3], 1 }
  0xb3   :  { %383 = vsyncpa [#allocation3 + $0x1], 1 }
  0xb4   :  { %384 = vsyncpa [#allocation6], 1 }
  0xb5   :  { %386 = vsyncpa [#allocation6 + $0x1], 1 }
  0xb6   :  { %387 = vsyncpa [#allocation4], 1 }
  0xb7   :  { %389 = vsyncpa [#allocation4 + $0x1], 1 }

</bundles_post_ra>
